<compile_context>
chip_gen: v7x
topology: tpu7x:2x2x1
jax: 0.10.0
libtpu: 0.0.40
codegen_flags: <defaults>
</compile_context>

<pallas_src>
import functools

import numpy as np

import jax
import jax.numpy as jnp
from jax.experimental import pallas as pl
from jax.experimental.pallas import tpu as pltpu


# ---------------------------------------------------------------------------
# Kernel: out = (sum_k slab[k]) * wmap   (single grid step per spatial tile)
# ---------------------------------------------------------------------------
def _fold_scale_kernel(slab_ref, wmap_ref, out_ref):
    # slab_ref: (K, C, tile_n)   residue-class slabs, input dtype (f32 or bf16)
    # wmap_ref: (1 or C, tile_n) scales / coverage_count, f32
    # out_ref : (C, tile_n)      f32
    acc = slab_ref[0].astype(jnp.float32)
    for k in range(1, slab_ref.shape[0]):      # K is small & static -> unrolled adds
        acc = acc + slab_ref[k].astype(jnp.float32)
    out_ref[...] = acc * wmap_ref[...]         # broadcasts (1, t) or (C, t)


# ---------------------------------------------------------------------------
# Wrapper-side layout plumbing
# ---------------------------------------------------------------------------
def _build_class_slabs(output_stack, C, H, W, n_h, n_w, patch, stride):
    """Decompose the overlapping patch stack into non-overlapping residue-class
    slabs, each zero-padded to a lane-dense (C, H, W) plane (input dtype kept)."""
    q = -(-patch // stride)          # class period (== patch // stride when stride | patch)
    cell = q * stride                # spacing of same-class patches (>= patch)
    x = output_stack.reshape(n_h, n_w, C, patch, patch)
    slabs = []
    for a in range(q):
        for b in range(q):
            xs = x[a::q, b::q]                       # (m_a, m_b, C, p, p), non-overlapping
            m_a, m_b = xs.shape[0], xs.shape[1]
            if m_a == 0 or m_b == 0:
                continue
            if cell > patch:
                # TODO(synk): zero-gap layout wastes (cell^2-p^2)/cell^2 of the slab
                # bytes when stride does not divide patch; an in-kernel gather would
                # avoid reading this padding.
                xs = jnp.pad(xs, ((0, 0), (0, 0), (0, 0),
                                  (0, cell - patch), (0, cell - patch)))
            # (m_a, m_b, C, cell, cell) -> (C, m_a*cell, m_b*cell) image layout
            img = xs.transpose(2, 0, 3, 1, 4).reshape(C, m_a * cell, m_b * cell)
            # place at spatial offset (a*stride, b*stride), crop/pad to (C, H, W)
            h0, w0 = a * stride, b * stride
            hx = min(m_a * cell, H - h0)
            wx = min(m_b * cell, W - w0)
            img = img[:, :hx, :wx]
            img = jnp.pad(img, ((0, 0), (h0, H - h0 - hx), (w0, W - w0 - wx)))
            slabs.append(img)
    return jnp.stack(slabs, axis=0)                  # (K, C, H, W)


def _pick_spatial_tile(NHW, K, C, wc, itemsize, budget=8 * 1024 * 1024):
    """Largest lane-dense tile along the flattened H*W axis whose per-step working
    set (double-buffered slab block + out block + wmap block) fits the budget.
    Prefer >= 2 blocks so both v7x TensorCores get work when that is cheap (on
    v5e/v6e the extra grid step costs ~0.35 us, negligible)."""
    if NHW % 128 != 0:
        return NHW                                  # single full block (still correct)
    per_col = 2 * K * C * itemsize + 2 * C * 4 + 2 * wc * 4   # bytes per lane column
    cands = [t for t in range(128, NHW + 1, 128) if NHW % t == 0]
    fits = [t for t in cands if t * per_col <= budget] or [128]
    tile = max(fits)
    if NHW // tile < 2:
        multi = [t for t in fits if NHW // t >= 2]
        if multi:
            tile = max(multi)
    return tile


@functools.partial(jax.jit, static_argnames=("full_shape", "patch", "stride"))
def patch_gather_avg_scale(output_stack, scales, *, full_shape, patch, stride):
    """Reconstruct (C, H, W) from overlapping patches, average overlaps, multiply
    by `scales`.  Accumulation + scaling run inside a Pallas TPU kernel."""
    C, H, W = full_shape
    n_p, c_p, ph, pw = output_stack.shape
    assert ph == patch and pw == patch and c_p == C
    n_h = (H - patch) // stride + 1
    n_w = (W - patch) // stride + 1
    assert n_p == n_h * n_w, "patch stack does not match patch grid"
    assert (H - patch) % stride == 0 and (W - patch) % stride == 0

    # ---- static coverage count -> fused weight map (scales / count) ----
    def cov(length, n):
        c = np.zeros(length, np.float32)
        for i in range(n):
            c[i * stride:i * stride + patch] += 1.0
        return c

    count = np.outer(cov(H, n_h), cov(W, n_w))       # (H, W), separable coverage
    assert (count > 0).all(), "stride > patch leaves uncovered pixels"
    inv_count = jnp.asarray(1.0 / count, jnp.float32)

    s_arr = jnp.asarray(scales, jnp.float32)
    assert s_arr.ndim <= 3, "scales must broadcast against (C, H, W)"
    w_full = s_arr * inv_count                       # (H, W) or (c, H, W) by broadcasting
    if w_full.ndim == 3 and w_full.shape[0] != 1:    # per-channel scales
        wmap = jnp.broadcast_to(w_full, (C, H, W)).reshape(C, H * W)
    else:                                            # channel-invariant scales
        wmap = w_full.reshape(1, H * W)
    wc = wmap.shape[0]

    # ---- lane-dense residue-class slabs, flattened to (K, C, H*W), input dtype ----
    slabs = _build_class_slabs(output_stack, C, H, W, n_h, n_w, patch, stride)
    K = slabs.shape[0]
    NHW = H * W
    slabs = slabs.reshape(K, C, NHW)

    # ---- tiling / VMEM sizing ----
    itemsize = np.dtype(output_stack.dtype).itemsize
    tile_n = _pick_spatial_tile(NHW, K, C, wc, itemsize)
    step_bytes = tile_n * (2 * K * C * itemsize + 2 * C * 4 + 2 * wc * 4)
    vmem_limit = int(min(max(4 * step_bytes, 16 * 1024 * 1024), 40 * 1024 * 1024))

    out = pl.pallas_call(
        _fold_scale_kernel,
        out_shape=jax.ShapeDtypeStruct((C, NHW), jnp.float32),
        grid=(NHW // tile_n,),
        in_specs=[
            pl.BlockSpec((K, C, tile_n), lambda n: (0, 0, n)),   # all K slabs, one tile
            pl.BlockSpec((wc, tile_n), lambda n: (0, n)),        # fused weight map
        ],
        out_specs=pl.BlockSpec((C, tile_n), lambda n: (0, n)),
        compiler_params=pltpu.CompilerParams(
            dimension_semantics=("parallel",),
            vmem_limit_bytes=vmem_limit),
    )(slabs, wmap)
    return out.reshape(C, H, W)


class OutputScalePatchTransformAvg:
    """JAX/Pallas port of OutputScalePatchTransform_avg."""

    def __init__(self, patch_size, stride):
        if len(patch_size) != len(stride):
            raise KeyError(
                f"Length of patch_size {len(patch_size)} and stride "
                f"{len(stride)} was given. They should be the same")
        self.patch_size = patch_size
        self.stride = stride

    def __call__(self, output_stack, full_vol, extra_params, iteration):
        patch = self.patch_size[iteration]
        stride = self.stride[iteration]
        # scale multiplication is fused into the Pallas kernel (weight map)
        return patch_gather_avg_scale(
            output_stack, extra_params["scales"],
            full_shape=tuple(full_vol.shape), patch=patch, stride=stride)


# ---------------------------------------------------------------------------
# Pure-JAX reference
# ---------------------------------------------------------------------------
def _reference(output_stack, full_shape, patch, stride, scale):
    C, H, W = full_shape
    n_h = (H - patch) // stride + 1
    n_w = (W - patch) // stride + 1
    acc = jnp.zeros((C, H, W), jnp.float32)
    cnt = jnp.zeros((1, H, W), jnp.float32)
    k = 0
    for i in range(n_h):
        for j in range(n_w):
            h0, w0 = i * stride, j * stride
            acc = acc.at[:, h0:h0 + patch, w0:w0 + patch].add(output_stack[k])
            cnt = cnt.at[:, h0:h0 + patch, w0:w0 + patch].add(1.0)
            k += 1
    return acc / cnt * scale


if __name__ == "__main__":
    key = jax.random.PRNGKey(0)

    # Small shapes consistent with the module: C=4, H=W=16, patch=8, stride=4
    C, H, W = 4, 16, 16
    patch, stride = 8, 4
    n_h = (H - patch) // stride + 1
    n_w = (W - patch) // stride + 1
    n_patches = n_h * n_w

    k1, k2 = jax.random.split(key)
    output_stack = jax.random.normal(k1, (n_patches, C, patch, patch),
                                     dtype=jnp.float32)
    full_vol = jnp.zeros((C, H, W), jnp.float32)   # provides target shape
    extra_params = {"scales": jnp.float32(1.5)}

    module = OutputScalePatchTransformAvg(patch_size=[patch], stride=[stride])
    recon = module(output_stack, full_vol, extra_params, 0)
    recon = jax.block_until_ready(recon)

    ref = _reference(output_stack, (C, H, W), patch, stride, 1.5)
    assert recon.shape == (C, H, W)
    assert jnp.allclose(recon, ref, atol=1e-5, rtol=1e-5), "mismatch vs reference"

    # Also exercise the per-channel-scales path.
    scales_c = jnp.arange(1, C + 1, dtype=jnp.float32).reshape(C, 1, 1)
    recon_c = jax.block_until_ready(
        module(output_stack, full_vol, {"scales": scales_c}, 0))
    ref_c = _reference(output_stack, (C, H, W), patch, stride, scales_c)
    assert jnp.allclose(recon_c, ref_c, atol=1e-5, rtol=1e-5), "per-channel mismatch"

    print("KERNEL_OK")
</pallas_src>

<mosaic_0001>
module attributes {stable_mosaic.version = 11 : i64} {
  func.func @_fold_scale_kernel(%arg0: i32, %arg1: memref<4x4x128xf32, #tpu.memory_space<vmem>>, %arg2: memref<1x128xf32, #tpu.memory_space<vmem>>, %arg3: memref<4x128xf32, #tpu.memory_space<vmem>>) attributes {dimension_semantics = [#tpu.dimension_semantics<parallel>], iteration_bounds = array<i64: 2>, scalar_prefetch = 0 : i64, scratch_operands = 0 : i64, tpu.core_type = #tpu.core_type<tc>, window_params = [{transform_indices = @transform_0, window_bounds = array<i64: 4, 4, 128>}, {transform_indices = @transform_1, window_bounds = array<i64: 1, 128>}, {transform_indices = @transform_2, window_bounds = array<i64: 4, 128>}]} {
    %c0 = arith.constant 0 : index
    %c0_0 = arith.constant 0 : index
    %c0_1 = arith.constant 0 : index
    %0 = vector.load %arg1[%c0, %c0_0, %c0_1] : memref<4x4x128xf32, #tpu.memory_space<vmem>>, vector<1x4x128xf32>
    %1 = vector.shape_cast %0 : vector<1x4x128xf32> to vector<4x128xf32>
    %c1 = arith.constant 1 : index
    %c0_2 = arith.constant 0 : index
    %c0_3 = arith.constant 0 : index
    %2 = vector.load %arg1[%c1, %c0_2, %c0_3] : memref<4x4x128xf32, #tpu.memory_space<vmem>>, vector<1x4x128xf32>
    %3 = vector.shape_cast %2 : vector<1x4x128xf32> to vector<4x128xf32>
    %4 = arith.addf %1, %3 : vector<4x128xf32>
    %c2 = arith.constant 2 : index
    %c0_4 = arith.constant 0 : index
    %c0_5 = arith.constant 0 : index
    %5 = vector.load %arg1[%c2, %c0_4, %c0_5] : memref<4x4x128xf32, #tpu.memory_space<vmem>>, vector<1x4x128xf32>
    %6 = vector.shape_cast %5 : vector<1x4x128xf32> to vector<4x128xf32>
    %7 = arith.addf %4, %6 : vector<4x128xf32>
    %c3 = arith.constant 3 : index
    %c0_6 = arith.constant 0 : index
    %c0_7 = arith.constant 0 : index
    %8 = vector.load %arg1[%c3, %c0_6, %c0_7] : memref<4x4x128xf32, #tpu.memory_space<vmem>>, vector<1x4x128xf32>
    %9 = vector.shape_cast %8 : vector<1x4x128xf32> to vector<4x128xf32>
    %10 = arith.addf %7, %9 : vector<4x128xf32>
    %c0_8 = arith.constant 0 : index
    %c0_9 = arith.constant 0 : index
    %11 = vector.load %arg2[%c0_8, %c0_9] : memref<1x128xf32, #tpu.memory_space<vmem>>, vector<1x128xf32>
    %12 = vector.broadcast %11 : vector<1x128xf32> to vector<4x128xf32>
    %13 = arith.mulf %10, %12 : vector<4x128xf32>
    %c0_10 = arith.constant 0 : index
    %c0_11 = arith.constant 0 : index
    %14 = vector.load %arg3[%c0_10, %c0_11] : memref<4x128xf32, #tpu.memory_space<vmem>>, vector<4x128xf32>
    tpu.vector_store %arg3[%c0_10, %c0_11], %13 {strides = array<i32>} : memref<4x128xf32, #tpu.memory_space<vmem>>, vector<4x128xf32>,
    return
  }
  func.func @transform_0(%arg0: i32) -> (i32, i32, i32) {
    %c0_i32 = arith.constant 0 : i32
    %c0_i32_0 = arith.constant 0 : i32
    %c0_i32_1 = arith.constant 0 : i32
    return %c0_i32, %c0_i32_0, %arg0 : i32, i32, i32
  }
  func.func @transform_1(%arg0: i32) -> (i32, i32) {
    %c0_i32 = arith.constant 0 : i32
    %c0_i32_0 = arith.constant 0 : i32
    return %c0_i32, %arg0 : i32, i32
  }
  func.func @transform_2(%arg0: i32) -> (i32, i32) {
    %c0_i32 = arith.constant 0 : i32
    %c0_i32_0 = arith.constant 0 : i32
    return %c0_i32, %arg0 : i32, i32
  }
}

</mosaic_0001>

<bundles_post_ra>
// kernel: patch_gather_avg_scale.1
= control target key start
LH: loop header
LB: loop body
LE: loop exit
PB: predicated region body
PF: predicated region fallthrough
CT: control target
= control target key end

     0   :  { %s374_s9 = smov 0   ;;  %s376_s10 = smov 0   ;;  %s431_s0 = inlined_call_operand.vmem [shape: f32[4,4,256], index: 0, kind: input, shape index: {}]   ;;  %s432_s1 = inlined_call_operand.vmem [shape: f32[1,256], index: 1, kind: input, shape index: {}]   ;;  %s433_s2 = inlined_call_operand.vmem [shape: f32[4,256], index: 2, kind: output, shape index: {}]  }
   0x1   :  { %s378_s11 = smov 0  }
   0x2 LB: > { %s296_s12 = sadd.s32 4294967295, %s357_s11   ;;  %s391_s13 = sadd.s32 1, %s357_s11   ;;  %s357_s11 = sphi %s378_s11, %s436_s11   ;;  %s353_s10 = sphi %s376_s10, %s435_s10   ;;  %s349_s9 = sphi %s374_s9, %s434_s9  }
   0x3   : > { %s16_s14 = ssub.s32 %s357_s11, %s391_s13  ;;  %s19_s15 = sadd.s32 1, %s353_s10 }
   0x4   : > { %p17_p0 = scmp.eq.s32.totalorder %s16_s14, 0  ;;  %p26_p1 = scmp.ne.s32.totalorder %s353_s10, %s349_s9 }
   0x5   : > { %p27_p2 = scmp.eq.s32.totalorder %s357_s11, 0  ;;  %p299_p4 = scmp.ge.s32.totalorder %s357_s11, 2 }
   0x6   : > { %s400_s16 = scalar_select %p17_p0, %s353_s10, %s19_s15  }
   0x7   : > { %p28_p3 = por %p27_p2, %p26_p1  ;;  %104 = sbr.rel (%p299_p4) target bundleno = 21 (0x15), region = 16 }
   0xe   : > { %107 = sbr.rel (!%p28_p3) target bundleno = 21 (0x15), region = 20  ;;  %s109_s17 = sand.u32 (%p28_p3), 1, %s353_s10  }
   0xf   : > { %s301_s18 = sshll.u32 (%p28_p3), %s357_s11, 2  ;;  %s300_s19 = sshll.u32 (%p28_p3), %s109_s17, 4 }
  0x10   : > { %s113_s22 = scalar_lea.vmem (%p28_p3), %s431_s0, %s301_s18  ;;  %s111_s23 = scalar_lea.vmem (%p28_p3), [#allocation2], %s300_s19 }
  0x11   : > { %v129_v0 = vld [vmem:[%s113_s22] sm:$0xf] (%p28_p3)  ;;  %v131_v1 = vld [vmem:[%s113_s22 + $0x8] sm:$0xf] (%p28_p3)  ;;  %v133_v2 = vld [vmem:[%s113_s22 + $0x10] sm:$0xf] (%p28_p3) }
  0x12   : > { %130 = vst [vmem:[%s111_s23] sm:$0xf] (%p28_p3), %v129_v0  ;;  %132 = vst [vmem:[%s111_s23 + $0x4] sm:$0xf] (%p28_p3), %v131_v1  ;;  %v135_v3 = vld [vmem:[%s113_s22 + $0x18] sm:$0xf] (%p28_p3) }
  0x13   : > { %134 = vst [vmem:[%s111_s23 + $0x8] sm:$0xf] (%p28_p3), %v133_v2  ;;  %136 = vst [vmem:[%s111_s23 + $0xc] sm:$0xf] (%p28_p3), %v135_v3 }
  0x15 PF: > { %p302_p5 = scmp.ge.s32.totalorder %s357_s11, 1  ;;  %p172_p6 = scmp.lt.s32.totalorder %s357_s11, 3 }
  0x17   : > { %p173_p7 = pnand %p302_p5, %p172_p6 }
  0x18   : > { %s179_s24 = sand.u32 (!%p173_p7), 1, %s349_s9   ;;  %p202_p8 = scmp.lt.s32.totalorder (!%p173_p7), %s296_s12, 1 }
  0x19   : > { %176 = sbr.rel (%p173_p7) target bundleno = 38 (0x26), region = 65  ;;  %s303_s25 = sshll.u32 (!%p173_p7), %s179_s24, 4 }
  0x1a   : > { %s181_s26 = scalar_lea.vmem (!%p173_p7), [#allocation2], %s303_s25 }
  0x1b   : > { %v209_v4 = vld [vmem:[%s181_s26] sm:$0xf] (!%p173_p7)  ;;  %v305_v5 = vld [vmem:[%s181_s26 + $0x4] sm:$0xf] (!%p173_p7)  ;;  %v306_v7 = vld [vmem:[%s181_s26 + $0x8] sm:$0xf] (!%p173_p7) }
  0x1c   : > { %v212_v6 = vadd.f32 (!%p173_p7), %v305_v5, %v209_v4  ;;  %v307_v8 = vld [vmem:[%s181_s26 + $0xc] sm:$0xf] (!%p173_p7) }
  0x1e   : > { %v215_v9 = vadd.f32 (!%p173_p7), %v306_v7, %v212_v6 }
  0x20   : > { %s438_s12 = smov (!%p202_p8, %s296_s12), 1  ;;  %v218_v11 = vadd.f32 %v307_v8, %v215_v9 }
  0x21   : > { %s204_s29 = scalar_lea.vmem %s432_s1, %s438_s12  ;;  %s304_s30 = sshll.u32 %s438_s12, 2 }
  0x22   : > { %v308_v10 = vld [vmem:[%s204_s29] ss:$0 sm:$0xff]  ;;  %s208_s5 = scalar_lea.vmem %s433_s2, %s304_s30 }
  0x23   : > { %v226_v12 = vmul.f32 %v308_v10, %v218_v11 }
  0x25   : > { %227 = vst [vmem:[%s208_s5] sm:$0xf] %v226_v12 }
  0x26 PF: > { %p9_p9 = scmp.ge.s32.totalorder %s391_s13, 4   ;;  %s434_s9 = smov %s353_s10 }
  0x27   : > { %s435_s10 = smov %s400_s16  ;;  %s436_s11 = smov %s391_s13 }
  0x28   :  { %11 = sbr.rel (!%p9_p9) target bundleno = 2 (0x2), region = 110 }

</bundles_post_ra>
